<compile_context>
chip_gen: v7x
topology: tpu7x:2x2x1
jax: 0.10.0
libtpu: 0.0.40
codegen_flags: <defaults>
</compile_context>

<pallas_src>
import functools

import jax
import jax.numpy as jnp
from jax import lax
from jax.experimental import pallas as pl
from jax.experimental.pallas import tpu as pltpu

# ----------------------------- configuration --------------------------------
IMG_CHANNELS = 3
FEAT_CHANNELS = (8, 16, 32)     # fine -> coarse pyramid feature channels
STRIDES = (1, 2, 4)             # fine -> coarse downsampling factors
DESC_DIM = 32
CTX_DIM = 16
STATE_DIM = DESC_DIM + CTX_DIM  # decoder state = [descriptor | context] channels
HIDDEN_DIM = 32
SCALES = ("coarse", "mid", "fine")   # decoder scales (coarse -> fine order)
KP_BLOCK = 8                    # keypoints gathered per grid_sample inner step


def _vmem_limit_bytes():
    """Generation-aware VMEM budget (v7x has only 64 MiB physical VMEM)."""
    try:
        cap = int(pltpu.get_tpu_info().vmem_capacity_bytes)
    except Exception:
        cap = 128 * 1024 * 1024
    return min(64 * 1024 * 1024, (cap * 3) // 4)


def _act_dtype():
    """bf16 activation/state storage on v6e/v7x (native bf16 VPU), f32 else."""
    try:
        kind = jax.devices()[0].device_kind.lower()
    except Exception:
        return jnp.float32
    if ("v6" in kind) or ("v7" in kind):
        return jnp.bfloat16
    return jnp.float32


VMEM_LIMIT = _vmem_limit_bytes()
ACT_DTYPE = _act_dtype()


def _pixel_tile(n_pix, max_tile=2048):
    """Pixel (lane-axis) tile: big tiles amortize the ~0.35us grid-step cost."""
    if n_pix <= max_tile:
        return n_pix                        # single full block (always legal)
    for t in (2048, 1024, 512, 256, 128):
        if n_pix % t == 0:
            return t
    return 2048                             # ragged final block masked by Pallas


# ----------------- Pallas kernel: encoder 1x1 conv on the VPU ---------------
def _enc_conv_kernel(x_ref, wt_ref, b_ref, o_ref):
    # C_in is tiny (3): a K=3 matmul wastes the MXU, so do 3 broadcast MACs.
    x = x_ref[0].astype(jnp.float32)                      # (C_in, TP)
    wt = wt_ref[...]                                      # (C_out, C_in) f32
    acc = wt[:, 0:1] * x[0:1, :]
    for c in range(1, x.shape[0]):
        acc = acc + wt[:, c:c + 1] * x[c:c + 1, :]
    acc = acc + b_ref[...]
    o_ref[0] = jnp.maximum(acc, 0.0).astype(o_ref.dtype)


def encoder_conv(x, w, b):
    """1x1 conv + ReLU. x: (B, C_in, P), w: (C_in, C_out), b: (C_out,)."""
    B, C_in, P = x.shape
    C_out = w.shape[1]
    TP = _pixel_tile(P)
    return pl.pallas_call(
        _enc_conv_kernel,
        out_shape=jax.ShapeDtypeStruct((B, C_out, P), ACT_DTYPE),
        grid=(B, pl.cdiv(P, TP)),
        in_specs=[
            pl.BlockSpec((1, C_in, TP), lambda bi, pi: (bi, 0, pi)),
            pl.BlockSpec((C_out, C_in), lambda bi, pi: (0, 0)),
            pl.BlockSpec((C_out, 1), lambda bi, pi: (0, 0)),
        ],
        out_specs=pl.BlockSpec((1, C_out, TP), lambda bi, pi: (bi, 0, pi)),
        compiler_params=pltpu.CompilerParams(
            dimension_semantics=("parallel", "parallel"),
            vmem_limit_bytes=VMEM_LIMIT),
    )(x, jnp.transpose(w), b.reshape(C_out, 1))


# ------------- Pallas kernels: fused per-scale decoder ----------------------
def _decode_first_kernel(feat_ref, w1_ref, b1_ref, w2_ref, b2_ref, o_ref):
    # Coarse scale: context is None, descriptor accumulator starts at 0.
    feat = feat_ref[0].astype(jnp.float32)
    h = jnp.dot(w1_ref[...], feat, preferred_element_type=jnp.float32) + b1_ref[...]
    h = jnp.maximum(h, 0.0)
    out = jnp.dot(w2_ref[...], h, preferred_element_type=jnp.float32) + b2_ref[...]
    o_ref[0, :DESC_DIM, :] = out[:DESC_DIM].astype(o_ref.dtype)
    o_ref[0, DESC_DIM:, :] = jnp.maximum(out[DESC_DIM:], 0.0).astype(o_ref.dtype)


def _decode_mid_kernel(feat_ref, st_ref, w1_ref, b1_ref, w2_ref, b2_ref, o_ref):
    # Fused: [feat|ctx] concat -> ONE conv1 matmul -> ReLU -> conv2 -> split
    # -> descriptor accumulation.
    feat = feat_ref[0].astype(jnp.float32)                 # (C_feat, TP)
    st = st_ref[0].astype(jnp.float32)                     # (STATE, TP)
    x_in = jnp.concatenate([feat, st[DESC_DIM:, :]], axis=0)
    h = jnp.dot(w1_ref[...], x_in, preferred_element_type=jnp.float32) + b1_ref[...]
    h = jnp.maximum(h, 0.0)
    out = jnp.dot(w2_ref[...], h, preferred_element_type=jnp.float32) + b2_ref[...]
    o_ref[0, :DESC_DIM, :] = (st[:DESC_DIM, :] + out[:DESC_DIM]).astype(o_ref.dtype)
    o_ref[0, DESC_DIM:, :] = jnp.maximum(out[DESC_DIM:], 0.0).astype(o_ref.dtype)


def _decode_final_kernel(feat_ref, st_ref, w1_ref, b1_ref, w2d_ref, b2d_ref, o_ref):
    # Final scale: only the descriptor rows of conv2 are needed, and the
    # descriptor is emitted PIXEL-MAJOR (in-kernel 2-D transpose) so the
    # fine-resolution map never round-trips HBM for a layout change.
    feat = feat_ref[0].astype(jnp.float32)
    st = st_ref[0].astype(jnp.float32)
    x_in = jnp.concatenate([feat, st[DESC_DIM:, :]], axis=0)
    h = jnp.dot(w1_ref[...], x_in, preferred_element_type=jnp.float32) + b1_ref[...]
    h = jnp.maximum(h, 0.0)
    delta = jnp.dot(w2d_ref[...], h, preferred_element_type=jnp.float32) + b2d_ref[...]
    desc = st[:DESC_DIM, :] + delta                        # (DESC, TP)
    o_ref[0] = jnp.transpose(desc).astype(o_ref.dtype)     # (TP, DESC)


def _weight_specs(c_in, c_out2):
    return [
        pl.BlockSpec((HIDDEN_DIM, c_in), lambda bi, pi: (0, 0)),
        pl.BlockSpec((HIDDEN_DIM, 1), lambda bi, pi: (0, 0)),
        pl.BlockSpec((c_out2, HIDDEN_DIM), lambda bi, pi: (0, 0)),
        pl.BlockSpec((c_out2, 1), lambda bi, pi: (0, 0)),
    ]


def decode_first(dparams, feat):
    B, C_feat, P = feat.shape
    TP = _pixel_tile(P)
    w1f_t = jnp.transpose(dparams["w1"][:C_feat])          # (HIDDEN, C_feat)
    b1 = dparams["b1"].reshape(HIDDEN_DIM, 1)
    w2_t = jnp.transpose(dparams["w2"])                    # (STATE, HIDDEN)
    b2 = dparams["b2"].reshape(STATE_DIM, 1)
    return pl.pallas_call(
        _decode_first_kernel,
        out_shape=jax.ShapeDtypeStruct((B, STATE_DIM, P), ACT_DTYPE),
        grid=(B, pl.cdiv(P, TP)),
        in_specs=[pl.BlockSpec((1, C_feat, TP), lambda bi, pi: (bi, 0, pi))]
        + _weight_specs(C_feat, STATE_DIM),
        out_specs=pl.BlockSpec((1, STATE_DIM, TP), lambda bi, pi: (bi, 0, pi)),
        compiler_params=pltpu.CompilerParams(
            dimension_semantics=("parallel", "parallel"),
            vmem_limit_bytes=VMEM_LIMIT),
    )(feat, w1f_t, b1, w2_t, b2)


def decode_mid(dparams, feat, state):
    B, C_feat, P = feat.shape
    TP = _pixel_tile(P)
    w1_t = jnp.transpose(dparams["w1"])                    # (HIDDEN, C_feat+CTX)
    b1 = dparams["b1"].reshape(HIDDEN_DIM, 1)
    w2_t = jnp.transpose(dparams["w2"])                    # (STATE, HIDDEN)
    b2 = dparams["b2"].reshape(STATE_DIM, 1)
    return pl.pallas_call(
        _decode_mid_kernel,
        out_shape=jax.ShapeDtypeStruct((B, STATE_DIM, P), ACT_DTYPE),
        grid=(B, pl.cdiv(P, TP)),
        in_specs=[
            pl.BlockSpec((1, C_feat, TP), lambda bi, pi: (bi, 0, pi)),
            pl.BlockSpec((1, STATE_DIM, TP), lambda bi, pi: (bi, 0, pi)),
        ] + _weight_specs(C_feat + CTX_DIM, STATE_DIM),
        out_specs=pl.BlockSpec((1, STATE_DIM, TP), lambda bi, pi: (bi, 0, pi)),
        compiler_params=pltpu.CompilerParams(
            dimension_semantics=("parallel", "parallel"),
            vmem_limit_bytes=VMEM_LIMIT),
    )(feat, state, w1_t, b1, w2_t, b2)


def decode_final(dparams, feat, state):
    """Final scale: returns the accumulated descriptor PIXEL-MAJOR (B, P, DESC)."""
    B, C_feat, P = feat.shape
    TP = _pixel_tile(P)
    w1_t = jnp.transpose(dparams["w1"])                    # (HIDDEN, C_feat+CTX)
    b1 = dparams["b1"].reshape(HIDDEN_DIM, 1)
    w2d_t = jnp.transpose(dparams["w2"][:, :DESC_DIM])     # (DESC, HIDDEN)
    b2d = dparams["b2"][:DESC_DIM].reshape(DESC_DIM, 1)
    return pl.pallas_call(
        _decode_final_kernel,
        out_shape=jax.ShapeDtypeStruct((B, P, DESC_DIM), ACT_DTYPE),
        grid=(B, pl.cdiv(P, TP)),
        in_specs=[
            pl.BlockSpec((1, C_feat, TP), lambda bi, pi: (bi, 0, pi)),
            pl.BlockSpec((1, STATE_DIM, TP), lambda bi, pi: (bi, 0, pi)),
        ] + _weight_specs(C_feat + CTX_DIM, DESC_DIM),
        out_specs=pl.BlockSpec((1, TP, DESC_DIM), lambda bi, pi: (bi, pi, 0)),
        compiler_params=pltpu.CompilerParams(
            dimension_semantics=("parallel", "parallel"),
            vmem_limit_bytes=VMEM_LIMIT),
    )(feat, state, w1_t, b1, w2d_t, b2d)


# ---------------- Pallas kernel: bilinear resize (F.interpolate) ------------
def _resize_kernel(x_ref, ry_ref, rxt_ref, o_ref, tmp_ref, *, tc, h_in):
    # W-resize: ONE flat matmul over the whole channel tile, cached in scratch
    # and reused across all output-row tiles of this (batch, channel-tile).
    @pl.when(pl.program_id(2) == 0)
    def _():
        tmp_ref[...] = jnp.dot(x_ref[0].astype(jnp.float32), rxt_ref[...],
                               preferred_element_type=jnp.float32)

    ry = ry_ref[...]                                        # (TR, H_in)

    def body(c, carry):
        base = pl.multiple_of(c * h_in, h_in)
        t = tmp_ref[pl.ds(base, h_in), :]                   # (H_in, W_out)
        o_ref[0, pl.ds(c, 1)] = (
            jnp.dot(ry, t, preferred_element_type=jnp.float32)[None]
            .astype(o_ref.dtype))
        return carry

    lax.fori_loop(0, tc, body, 0)


def _resize_matrix(out_size, in_size):
    """Row-stochastic matrix matching F.interpolate(bilinear, align_corners=False)."""
    dst = jnp.arange(out_size, dtype=jnp.float32)
    src = (dst + 0.5) * (in_size / out_size) - 0.5
    src = jnp.clip(src, 0.0, float(in_size - 1))
    i0 = jnp.floor(src)
    frac = src - i0
    i0 = i0.astype(jnp.int32)
    i1 = jnp.minimum(i0 + 1, in_size - 1)
    m = ((1.0 - frac)[:, None] * jax.nn.one_hot(i0, in_size, dtype=jnp.float32)
         + frac[:, None] * jax.nn.one_hot(i1, in_size, dtype=jnp.float32))
    return m


def _resize_tiles(C, H_in, W_in, H_out, W_out, in_item, out_item):
    """Pick (channel tile, output-row tile) from the generation-aware budget."""
    budget = max(VMEM_LIMIT // 3, 4 * 1024 * 1024)

    def fits(tc, tr):
        x_blk = 2 * tc * H_in * W_in * in_item              # double-buffered in
        tmp_blk = tc * H_in * W_out * 4                     # f32 scratch
        o_blk = 2 * tc * tr * W_out * out_item              # double-buffered out
        small = 4 * (H_out * H_in + W_in * W_out + tr * H_in)
        return x_blk + tmp_blk + o_blk + small <= budget

    tcs = [C] + [d for d in range(C - 1, 0, -1)
                 if C % d == 0 and (d * H_in) % 8 == 0]
    trs = [H_out] + [d for d in range(H_out - 1, 0, -1)
                     if H_out % d == 0 and d % 8 == 0]
    for tc in tcs:
        for tr in trs:
            if fits(tc, tr):
                return tc, tr
    return tcs[-1], trs[-1]


def bilinear_resize(state, in_size, out_size):
    """F.interpolate(bilinear, align_corners=False) on (B, C, H_in*W_in) state."""
    B, C, P_in = state.shape
    H_in, W_in = in_size
    H_out, W_out = out_size
    x = state.reshape(B, C * H_in, W_in)                    # free XLA reshape
    ry = _resize_matrix(H_out, H_in)                        # (H_out, H_in)
    rx_t = jnp.transpose(_resize_matrix(W_out, W_in))       # (W_in, W_out)
    tc, tr = _resize_tiles(C, H_in, W_in, H_out, W_out,
                           jnp.dtype(state.dtype).itemsize,
                           jnp.dtype(ACT_DTYPE).itemsize)
    # TODO(synk): fusing this resize into the following decode step would remove
    # one full write+read of the (B, 48, H*W) state; it needs a relayout-free
    # in-kernel (C, TR, W)->(C, TR*W) merge, so it is left as a follow-up.
    out = pl.pallas_call(
        functools.partial(_resize_kernel, tc=tc, h_in=H_in),
        out_shape=jax.ShapeDtypeStruct((B, C, H_out, W_out), ACT_DTYPE),
        grid=(B, C // tc, H_out // tr),
        in_specs=[
            pl.BlockSpec((1, tc * H_in, W_in), lambda b, ci, ri: (b, ci, 0)),
            pl.BlockSpec((tr, H_in), lambda b, ci, ri: (ri, 0)),
            pl.BlockSpec((W_in, W_out), lambda b, ci, ri: (0, 0)),
        ],
        out_specs=pl.BlockSpec((1, tc, tr, W_out), lambda b, ci, ri: (b, ci, ri, 0)),
        scratch_shapes=[pltpu.VMEM((tc * H_in, W_out), jnp.float32)],
        compiler_params=pltpu.CompilerParams(
            dimension_semantics=("parallel", "parallel", "arbitrary"),
            vmem_limit_bytes=VMEM_LIMIT),
    )(x, ry, rx_t)
    return out.reshape(B, C, H_out * W_out)


# --------------- Pallas kernel: 4-tap bilinear grid_sample ------------------
def _grid_sample_kernel(idx_ref, wgt_ref, desc_ref, o_ref, buf_ref, sem_ref,
                        *, kpb, n_blocks):
    # idx_ref: SMEM (B, 4, Np) clipped flat pixel indices (scalar-prefetched).
    # wgt_ref: SMEM (B, 4, Np) tap weights (zeroed when out of bounds).
    # desc_ref: HBM (B, H*W, C) pixel-major descriptor (pl.ANY, DMA-gathered).
    b = pl.program_id(0)

    def issue(kb, slot):
        base = kb * kpb
        for j in range(kpb):
            for t in range(4):
                row = idx_ref[b, t, base + j]
                pltpu.make_async_copy(
                    desc_ref.at[b, pl.ds(row, 1), :],
                    buf_ref.at[slot, pl.ds(t * kpb + j, 1), :],
                    sem_ref.at[slot]).start()

    issue(0, 0)

    def body(kb, carry):
        slot = lax.rem(kb, 2)
        # Wait for the 4*kpb tap-row DMAs of the current slot.
        for _ in range(4 * kpb):
            pltpu.make_async_copy(
                desc_ref.at[b, pl.ds(0, 1), :],
                buf_ref.at[slot, pl.ds(0, 1), :],
                sem_ref.at[slot]).wait()

        @pl.when(kb + 1 < n_blocks)
        def _():
            issue(kb + 1, 1 - slot)                 # prefetch next block

        base = pl.multiple_of(kb * kpb, kpb)
        rows = buf_ref[slot].astype(jnp.float32)    # (4*kpb, C)
        out_rows = []
        for j in range(kpb):
            n = base + j
            acc = wgt_ref[b, 0, n] * rows[0 * kpb + j:0 * kpb + j + 1, :]
            acc = acc + wgt_ref[b, 1, n] * rows[1 * kpb + j:1 * kpb + j + 1, :]
            acc = acc + wgt_ref[b, 2, n] * rows[2 * kpb + j:2 * kpb + j + 1, :]
            acc = acc + wgt_ref[b, 3, n] * rows[3 * kpb + j:3 * kpb + j + 1, :]
            out_rows.append(acc)
        o_ref[0, pl.ds(base, kpb), :] = (
            jnp.concatenate(out_rows, axis=0).astype(o_ref.dtype))
        return carry

    lax.fori_loop(0, n_blocks, body, 0)


def _grid_sample_prepare(keypoints, H, W):
    """O(N) XLA prep: tap indices (clipped) + tap weights (zeroed when OOB)."""
    kx = keypoints[..., 0]
    ky = keypoints[..., 1]
    x = ((kx + 1.0) * W - 1.0) * 0.5          # align_corners=False un-normalization
    y = ((ky + 1.0) * H - 1.0) * 0.5
    x0f = jnp.floor(x)
    y0f = jnp.floor(y)
    fx = x - x0f
    fy = y - y0f
    x0 = x0f.astype(jnp.int32)
    y0 = y0f.astype(jnp.int32)
    x1 = x0 + 1
    y1 = y0 + 1

    def inb(xi, yi):
        return ((xi >= 0) & (xi < W) & (yi >= 0) & (yi < H)).astype(jnp.float32)

    w00 = (1.0 - fy) * (1.0 - fx) * inb(x0, y0)
    w01 = (1.0 - fy) * fx * inb(x1, y0)
    w10 = fy * (1.0 - fx) * inb(x0, y1)
    w11 = fy * fx * inb(x1, y1)

    x0c = jnp.clip(x0, 0, W - 1)
    x1c = jnp.clip(x1, 0, W - 1)
    y0c = jnp.clip(y0, 0, H - 1)
    y1c = jnp.clip(y1, 0, H - 1)
    idx = jnp.stack([y0c * W + x0c, y0c * W + x1c,
                     y1c * W + x0c, y1c * W + x1c], axis=1).astype(jnp.int32)
    wgt = jnp.stack([w00, w01, w10, w11], axis=1).astype(jnp.float32)
    return idx, wgt                                  # (B, 4, N), (B, 4, N)


def grid_sample_bilinear(desc_pm, keypoints, H, W):
    """F.grid_sample(desc, kps[:, None], bilinear, zeros, align_corners=False).

    desc_pm: (B, H*W, C) pixel-major descriptor (stays in HBM); returns (B, N, C).
    """
    B, HW, C = desc_pm.shape
    N = keypoints.shape[1]
    pad = (-N) % KP_BLOCK
    if pad:
        keypoints = jnp.pad(keypoints, ((0, 0), (0, pad), (0, 0)))
    Np = N + pad
    n_blocks = Np // KP_BLOCK
    idx, wgt = _grid_sample_prepare(keypoints, H, W)
    # TODO(synk): for very large keypoint counts, chunk keypoints across calls
    # (SMEM index/weight tables are padded to (8, 128) words).
    grid_spec = pltpu.PrefetchScalarGridSpec(
        num_scalar_prefetch=1,
        grid=(B,),
        in_specs=[
            pl.BlockSpec(memory_space=pltpu.MemorySpace.SMEM),   # tap weights
            pl.BlockSpec(memory_space=pl.ANY),                   # descriptor (HBM)
        ],
        out_specs=pl.BlockSpec((1, Np, C), lambda b, idx_ref: (b, 0, 0)),
        scratch_shapes=[
            pltpu.VMEM((2, 4 * KP_BLOCK, C), desc_pm.dtype),     # double buffer
            pltpu.SemaphoreType.DMA((2,)),
        ])
    out = pl.pallas_call(
        functools.partial(_grid_sample_kernel, kpb=KP_BLOCK, n_blocks=n_blocks),
        out_shape=jax.ShapeDtypeStruct((B, Np, C), jnp.float32),
        grid_spec=grid_spec,
        compiler_params=pltpu.CompilerParams(
            dimension_semantics=("parallel",),
            vmem_limit_bytes=VMEM_LIMIT),
    )(idx, wgt, desc_pm)
    return out[:, :N, :]


# ------------------------------ synthetic modules ---------------------------
def _avg_pool(x, k):
    # TODO(synk): fuse the stride-k average pool into encoder_conv so the
    # pooled pyramid never round-trips HBM at full image resolution.
    if k == 1:
        return x
    B, C, H, W = x.shape
    return x.reshape(B, C, H // k, k, W // k, k).mean(axis=(3, 5))


def encoder_forward(enc_params, images):
    """Synthesized encoder. Returns (features fine->coarse as (B,C,H*W), sizes)."""
    B = images.shape[0]
    features, sizes = [], []
    for (w, b), stride in zip(enc_params, STRIDES):
        pooled = _avg_pool(images, stride)
        H, W = pooled.shape[-2:]
        feat = encoder_conv(pooled.reshape(B, IMG_CHANNELS, H * W), w, b)
        features.append(feat)
        sizes.append((H, W))
    return features, sizes


def dedode_descriptor_forward(params, images, keypoints):
    """Mirrors DeDoDeDescriptor.forward exactly."""
    features, sizes = encoder_forward(params["encoder"], images)
    rev_feats = list(reversed(features))
    rev_sizes = list(reversed(sizes))
    state = None                      # (B, STATE_DIM, P): [descriptor | context]
    desc_pm = None
    for idx, scale in enumerate(SCALES):
        dparams = params["decoder"][scale]
        feat = rev_feats[idx]
        last = idx == len(SCALES) - 1
        if state is None:
            state = decode_first(dparams, feat)
        elif not last:
            state = decode_mid(dparams, feat, state)
        else:
            desc_pm = decode_final(dparams, feat, state)      # (B, H*W, DESC)
        if not last:
            state = bilinear_resize(state, rev_sizes[idx], rev_sizes[idx + 1])
    Hf, Wf = sizes[0]
    return grid_sample_bilinear(desc_pm, keypoints, Hf, Wf)   # (B, N, DESC)


# ------------------------------ parameter init ------------------------------
def init_params(key):
    keys = iter(jax.random.split(key, 4 * len(SCALES) + 2 * len(FEAT_CHANNELS)))
    enc = []
    for c in FEAT_CHANNELS:
        w = jax.random.normal(next(keys), (IMG_CHANNELS, c), jnp.float32) / jnp.sqrt(IMG_CHANNELS)
        b = 0.1 * jax.random.normal(next(keys), (c,), jnp.float32)
        enc.append((w, b))
    dec = {}
    for scale, c_feat in zip(SCALES, FEAT_CHANNELS[::-1]):
        c_in = c_feat + CTX_DIM
        dec[scale] = {
            "w1": jax.random.normal(next(keys), (c_in, HIDDEN_DIM), jnp.float32) / jnp.sqrt(c_in),
            "b1": 0.1 * jax.random.normal(next(keys), (HIDDEN_DIM,), jnp.float32),
            "w2": jax.random.normal(next(keys), (HIDDEN_DIM, DESC_DIM + CTX_DIM),
                                    jnp.float32) / jnp.sqrt(HIDDEN_DIM),
            "b2": 0.1 * jax.random.normal(next(keys), (DESC_DIM + CTX_DIM,), jnp.float32),
        }
    return {"encoder": enc, "decoder": dec}


# ------------------------------------ main -----------------------------------
if __name__ == "__main__":
    key = jax.random.PRNGKey(0)
    k_img, k_kp, k_par = jax.random.split(key, 3)

    B, H, W, N = 2, 16, 16, 8
    images = jax.random.normal(k_img, (B, IMG_CHANNELS, H, W), jnp.float32)
    keypoints = jax.random.uniform(k_kp, (B, N, 2), jnp.float32, minval=-1.0, maxval=1.0)
    params = init_params(k_par)

    out = dedode_descriptor_forward(params, images, keypoints)
    out = jax.block_until_ready(out)
    assert out.shape == (B, N, DESC_DIM), out.shape
    assert bool(jnp.all(jnp.isfinite(out)))
    print("KERNEL_OK")
</pallas_src>

<mosaic_0001>
module attributes {stable_mosaic.version = 11 : i64} {
  func.func @_enc_conv_kernel(%arg0: i32, %arg1: i32, %arg2: memref<1x3x256xf32, #tpu.memory_space<vmem>>, %arg3: memref<8x3xf32, #tpu.memory_space<vmem>>, %arg4: memref<8x1xf32, #tpu.memory_space<vmem>>, %arg5: memref<1x8x256xf32, #tpu.memory_space<vmem>>) attributes {dimension_semantics = [#tpu.dimension_semantics<parallel>, #tpu.dimension_semantics<parallel>], iteration_bounds = array<i64: 2, 1>, scalar_prefetch = 0 : i64, scratch_operands = 0 : i64, tpu.core_type = #tpu.core_type<tc>, window_params = [{transform_indices = @transform_0, window_bounds = array<i64: 1, 3, 256>}, {pipeline_mode = #tpu.pipeline_mode<synchronous>, transform_indices = @transform_1, window_bounds = array<i64: 8, 3>}, {pipeline_mode = #tpu.pipeline_mode<synchronous>, transform_indices = @transform_2, window_bounds = array<i64: 8, 1>}, {transform_indices = @transform_3, window_bounds = array<i64: 1, 8, 256>}]} {
    %c0 = arith.constant 0 : index
    %c0_0 = arith.constant 0 : index
    %c0_1 = arith.constant 0 : index
    %0 = vector.load %arg2[%c0, %c0_0, %c0_1] : memref<1x3x256xf32, #tpu.memory_space<vmem>>, vector<1x3x256xf32>
    %1 = vector.shape_cast %0 : vector<1x3x256xf32> to vector<3x256xf32>
    %c0_2 = arith.constant 0 : index
    %c0_3 = arith.constant 0 : index
    %2 = vector.load %arg3[%c0_2, %c0_3] : memref<8x3xf32, #tpu.memory_space<vmem>>, vector<8x3xf32>
    %3 = vector.extract_strided_slice %2 {offsets = [0, 0], sizes = [8, 1], strides = [1, 1]} : vector<8x3xf32> to vector<8x1xf32>
    %4 = vector.extract_strided_slice %1 {offsets = [0, 0], sizes = [1, 256], strides = [1, 1]} : vector<3x256xf32> to vector<1x256xf32>
    %5 = vector.broadcast %3 : vector<8x1xf32> to vector<8x256xf32>
    %6 = vector.broadcast %4 : vector<1x256xf32> to vector<8x256xf32>
    %7 = arith.mulf %5, %6 : vector<8x256xf32>
    %8 = vector.extract_strided_slice %2 {offsets = [0, 1], sizes = [8, 1], strides = [1, 1]} : vector<8x3xf32> to vector<8x1xf32>
    %9 = vector.extract_strided_slice %1 {offsets = [1, 0], sizes = [1, 256], strides = [1, 1]} : vector<3x256xf32> to vector<1x256xf32>
    %10 = vector.broadcast %8 : vector<8x1xf32> to vector<8x256xf32>
    %11 = vector.broadcast %9 : vector<1x256xf32> to vector<8x256xf32>
    %12 = arith.mulf %10, %11 : vector<8x256xf32>
    %13 = arith.addf %7, %12 : vector<8x256xf32>
    %14 = vector.extract_strided_slice %2 {offsets = [0, 2], sizes = [8, 1], strides = [1, 1]} : vector<8x3xf32> to vector<8x1xf32>
    %15 = vector.extract_strided_slice %1 {offsets = [2, 0], sizes = [1, 256], strides = [1, 1]} : vector<3x256xf32> to vector<1x256xf32>
    %16 = vector.broadcast %14 : vector<8x1xf32> to vector<8x256xf32>
    %17 = vector.broadcast %15 : vector<1x256xf32> to vector<8x256xf32>
    %18 = arith.mulf %16, %17 : vector<8x256xf32>
    %19 = arith.addf %13, %18 : vector<8x256xf32>
    %c0_4 = arith.constant 0 : index
    %c0_5 = arith.constant 0 : index
    %20 = vector.load %arg4[%c0_4, %c0_5] : memref<8x1xf32, #tpu.memory_space<vmem>>, vector<8x1xf32>
    %21 = vector.broadcast %20 : vector<8x1xf32> to vector<8x256xf32>
    %22 = arith.addf %19, %21 : vector<8x256xf32>
    %cst = arith.constant 0.000000e+00 : f32
    %23 = vector.broadcast %cst : f32 to vector<8x256xf32>
    %24 = arith.maximumf %22, %23 : vector<8x256xf32>
    %c0_6 = arith.constant 0 : index
    %c0_7 = arith.constant 0 : index
    %c0_8 = arith.constant 0 : index
    %25 = vector.load %arg5[%c0_6, %c0_7, %c0_8] : memref<1x8x256xf32, #tpu.memory_space<vmem>>, vector<1x8x256xf32>
    %26 = vector.shape_cast %25 : vector<1x8x256xf32> to vector<8x256xf32>
    %27 = vector.shape_cast %24 : vector<8x256xf32> to vector<1x8x256xf32>
    tpu.vector_store %arg5[%c0_6, %c0_7, %c0_8], %27 {strides = array<i32>} : memref<1x8x256xf32, #tpu.memory_space<vmem>>, vector<1x8x256xf32>,
    return
  }
  func.func @transform_0(%arg0: i32, %arg1: i32) -> (i32, i32, i32) {
    %c0_i32 = arith.constant 0 : i32
    %c0_i32_0 = arith.constant 0 : i32
    return %arg0, %c0_i32, %arg1 : i32, i32, i32
  }
  func.func @transform_1(%arg0: i32, %arg1: i32) -> (i32, i32) {
    %c0_i32 = arith.constant 0 : i32
    %c0_i32_0 = arith.constant 0 : i32
    %c0_i32_1 = arith.constant 0 : i32
    return %c0_i32, %c0_i32_0 : i32, i32
  }
  func.func @transform_2(%arg0: i32, %arg1: i32) -> (i32, i32) {
    %c0_i32 = arith.constant 0 : i32
    %c0_i32_0 = arith.constant 0 : i32
    %c0_i32_1 = arith.constant 0 : i32
    return %c0_i32, %c0_i32_0 : i32, i32
  }
  func.func @transform_3(%arg0: i32, %arg1: i32) -> (i32, i32, i32) {
    %c0_i32 = arith.constant 0 : i32
    %c0_i32_0 = arith.constant 0 : i32
    return %arg0, %c0_i32, %arg1 : i32, i32, i32
  }
}

</mosaic_0001>

<bundles_post_ra>
// kernel: tpu_custom_call.1
= control target key start
LH: loop header
LB: loop body
LE: loop exit
PB: predicated region body
PF: predicated region fallthrough
CT: control target
= control target key end

     0   :  { %8 = vsyncpa [#allocation3], 0  ;;  %s1001_s0 = inlined_call_operand.hbm [shape: f32[2,3,256], index: 0, kind: input, shape index: {}]   ;;  %s1002_s1 = inlined_call_operand.hbm [shape: f32[8,3], index: 1, kind: input, shape index: {}]   ;;  %s1003_s2 = inlined_call_operand.hbm [shape: f32[8,1], index: 2, kind: input, shape index: {}]   ;;  %s1004_s3 = inlined_call_operand.hbm [shape: f32[2,8,256], index: 3, kind: output, shape index: {}]  }
   0x1   :  { %10 = vsyncpa [#allocation3 + $0x1], 0 }
   0x2   :  { %11 = vsyncpa [#allocation6], 0 }
   0x3   :  { %12 = vsyncpa [#allocation4], 0 }
   0x4   :  { %14 = vsyncpa [#allocation4 + $0x1], 0  ;;  %s757_s12 = smov 0   ;;  %s759_s13 = smov 0  }
   0x5   :  { %s761_s14 = smov 0   ;;  %s763_s15 = smov 0  }
   0x6   :  { %s765_s16 = smov 0   ;;  %s767_s17 = smov 0  }
   0x7 LB: > { %s444_s18 = sadd.s32 4294967295, %s728_s17   ;;  %s445_s19 = sadd.s32 4294967294, %s728_s17   ;;  %s728_s17 = sphi %s767_s17, %s20_s17   ;;  %s724_s16 = sphi %s765_s16, %s1027_s16   ;;  %s720_s15 = sphi %s763_s15, %s1026_s15   ;;  %s716_s14 = sphi %s761_s14, %s1025_s14   ;;  %s712_s13 = sphi %s759_s13, %s1024_s13   ;;  %s708_s12 = sphi %s757_s12, %s1023_s12  }
   0x8   : > { %p54_p0 = scmp.ne.s32.totalorder %s712_s13, %s708_s12  ;;  %p791_p1 = scmp.eq.s32.totalorder %s444_s18, 0 }
   0x9   : > { %p795_p2 = scmp.eq.s32.totalorder %s444_s18, 1  ;;  %p128_p3 = scmp.eq.s32.totalorder %s445_s19, 1 }
   0xa   : > { %s1009_s20 = scalar_select %p791_p1, 1, 0 }
   0xb   : > { %s1010_s21 = scalar_select %p795_p2, 1, 0 }
   0xc   : > { %p801_p4 = por %p791_p1, %p54_p0  ;;  %p446_p5 = scmp.ge.s32.totalorder %s728_s17, 1 }
   0xd   : > { %p806_p6 = por %p128_p3, %p54_p0  ;;  %p135_p7 = scmp.lt.s32.totalorder %s728_s17, 3 }
   0xe   : > { %s1011_s22 = scalar_select %p801_p4, 1, 0 }
   0xf   : > { %s1012_s23 = scalar_select %p806_p6, 1, 0 }
  0x10   : > { %p811_p8 = pnand %p446_p5, %p135_p7  ;;  %s730_s25 = smov [#allocation5]  }
  0x11   : > { %s148_s26 = sshll.u32 %s730_s25, 4  ;;  %s731_s27 = smov [#allocation7]   ;;  %s149_s26 = int_to_ptr.vmem [resolvable:$true] %s148_s26 }
  0x12   : > { %s1013_s24 = scalar_select %p811_p8, 1, 0 }
  0x13   : > { %p477_p10 = pneg %p811_p8  ;;  %s159_s28 = sshll.u32 %s731_s27, 4  ;;  %s824_s28 = int_to_ptr.vmem [resolvable:$true] %s159_s28 }
  0x14   : > { %s556_s5 = scalar_lea.hbm %s1002_s1, 128 }
  0x15   : > { %p820_p11 = pnand %p477_p10, %p791_p1  ;;  %p557_p12 = scmp.ne.s32.totalorder %s1002_s1, %s556_s5 }
  0x16   : > { %p563_p5 = scmp.lt.u32.totalorder %s556_s5, %s1002_s1 }
  0x17   : > { %p558_p13 = pneg %p820_p11 }
  0x19   : > { %p559_p0 = pnand %p558_p13, %p557_p12 }
  0x1b   : > { %p560_p3 = pneg %p559_p0 }
  0x1d   : > { %p565_p7 = pnand %p563_p5, %p560_p3 }
  0x1f   : > { %568 = shalt.err (!%p565_p7)
}
  0x20   : > { %s569_s10 = scalar_lea.vmem %s149_s26, 128  ;;  %p577_p1 = scmp.lt.s32.totalorder %s149_s26, %s149_s26 }
  0x21   : > { %p570_p10 = scmp.ne.s32.totalorder %s149_s26, %s569_s10  ;;  %p578_p4 = scmp.lt.s32.totalorder %s569_s10, %s569_s10 }
  0x23   : > { %p572_p9 = pnand %p570_p10, %p558_p13  ;;  %p579_p8 = por %p578_p4, %p577_p1 }
  0x25   : > { %p573_p6 = pneg %p572_p9 }
  0x27   : > { %p580_p2 = pnand %p579_p8, %p573_p6 }
  0x29   : > { %583 = shalt.err (!%p580_p2)
}
  0x2a   : > { %480 = dma.hbm_to_vmem [thread:$0]  (!%p820_p11), %s1002_s1, 128, %s149_s26, [#allocation6]  }
  0x2b   : > { %s584_s27 = scalar_lea.hbm %s1003_s2, 128 }
  0x2c   : > { %p585_p9 = scmp.ne.s32.totalorder %s1003_s2, %s584_s27  ;;  %p591_p2 = scmp.lt.u32.totalorder %s584_s27, %s1003_s2 }
  0x2e   : > { %p587_p1 = pnand %p585_p9, %p558_p13 }
  0x30   : > { %p588_p4 = pneg %p587_p1 }
  0x32   : > { %p593_p6 = pnand %p591_p2, %p588_p4 }
  0x34   : > { %596 = shalt.err (!%p593_p6)
}
  0x35   : > { %s597_s26 = scalar_lea.vmem %s824_s28, 128  ;;  %p605_p3 = scmp.lt.s32.totalorder %s824_s28, %s824_s28 }
  0x36   : > { %p598_p8 = scmp.ne.s32.totalorder %s824_s28, %s597_s26  ;;  %p606_p5 = scmp.lt.s32.totalorder %s597_s26, %s597_s26 }
  0x38   : > { %p600_p12 = pnand %p598_p8, %p558_p13  ;;  %p607_p7 = por %p606_p5, %p605_p3 }
  0x3a   : > { %p601_p0 = pneg %p600_p12 }
  0x3c   : > { %p608_p10 = pnand %p607_p7, %p601_p0 }
  0x3e   : > { %611 = shalt.err (!%p608_p10)
}
  0x3f   : > { %483 = dma.hbm_to_vmem [thread:$0]  (!%p820_p11), %s1003_s2, 128, %s824_s28, [#allocation6]  }
  0x40   : > { %s32_s9 = sadd.s32 1, %s724_s16  ;;  %s41_s10 = sadd.s32 1, %s716_s14 }
  0x41   : > { %p34_p13 = scmp.ge.s32.totalorder %s32_s9, 2  ;;  %p48_p9 = scmp.ne.s32.totalorder %s716_s14, %s712_s13 }
  0x42   : > { %p49_p1 = scmp.eq.s32.totalorder %s728_s17, 0  ;;  %p494_p4 = scmp.lt.s32.totalorder %s728_s17, 2 }
  0x43   : > { %s1029_s9 = smov (%p34_p13, %s32_s9), 0  ;;  %p1015_p6 = scmp.ne.s32.totalorder %s1010_s21, 0 }
  0x44   : > { %p50_p2 = por %p49_p1, %p48_p9  ;;  %s36_s11 = ssub.s32 %s724_s16, %s1029_s9 }
  0x45   : > { %p883_p8 = por %p1015_p6, %p48_p9  ;;  %s170_s18 = sand.u32 1, %s716_s14  }
  0x46   : > { %p39_p12 = scmp.eq.s32.totalorder %s36_s11, 0  ;;  %s450_s28 = sshll.u32 %s170_s18, 3 }
  0x47   : > { %s463_s19 = sshll.u32 %s724_s16, 7  ;;  %s174_s21 = scalar_lea.vmem [#allocation2], %s450_s28 }
  0x48   : > { %s892_s25 = scalar_select %p39_p12, %s716_s14, %s41_s10  }
  0x49   : > { %s897_s4 = scalar_lea.hbm %s1001_s0, %s463_s19  ;;  %s184_s5 = sshll.u32 %s174_s21, 4  ;;  %s905_s5 = int_to_ptr.vmem [resolvable:$true] %s184_s5 }
  0x4a   : > { %p901_p11 = pnand %p494_p4, %p50_p2  ;;  %s171_s26 = scalar_lea.sflag [#allocation3], %s170_s18 }
  0x4b   : > { %s612_s7 = scalar_lea.hbm %s897_s4, 128  ;;  %s617_s11 = scalar_lea.hbm %s1001_s0, 256 }
  0x4c   : > { %p613_p0 = scmp.ne.s32.totalorder %s897_s4, %s612_s7  ;;  %p614_p3 = pneg %p901_p11 }
  0x4d   : > { %p618_p10 = scmp.lt.u32.totalorder %s897_s4, %s1001_s0  ;;  %p619_p13 = scmp.lt.u32.totalorder %s617_s11, %s612_s7 }
  0x4e   : > { %p615_p5 = pnand %p614_p3, %p613_p0  ;;  %p621_p1 = scmp.lt.u32.totalorder %s612_s7, %s897_s4 }
  0x4f   : > { %p620_p9 = por %p619_p13, %p618_p10 }
  0x50   : > { %p616_p7 = pneg %p615_p5 }
  0x51   : > { %p622_p4 = por %p621_p1, %p620_p9 }
  0x53   : > { %p623_p2 = pnand %p622_p4, %p616_p7 }
  0x55   : > { %626 = shalt.err (!%p623_p2)
}
  0x56   : > { %s627_s18 = scalar_lea.vmem %s905_s5, 128  ;;  %s732_s27 = smov [#allocation2]  }
  0x57   : > { %p628_p6 = scmp.ne.s32.totalorder %s905_s5, %s627_s18  ;;  %s632_s30 = sshll.u32 %s732_s27, 4  ;;  %s633_s30 = int_to_ptr.vmem [resolvable:$false] %s632_s30 }
  0x58   : > { %s634_s21 = scalar_lea.vmem %s633_s30, 256  ;;  %p635_p5 = scmp.lt.s32.totalorder %s905_s5, %s633_s30 }
  0x59   : > { %p630_p12 = pnand %p628_p6, %p614_p3  ;;  %p636_p10 = scmp.lt.s32.totalorder %s634_s21, %s627_s18 }
  0x5b   : > { %p631_p0 = pneg %p630_p12  ;;  %p637_p13 = por %p636_p10, %p635_p5 }
  0x5d   : > { %p638_p9 = pnand %p637_p13, %p631_p0 }
  0x5f   : > { %641 = shalt.err (!%p638_p9)
}
  0x60   : > { %487 = dma.hbm_to_vmem [thread:$0]  (!%p901_p11), %s897_s4, 128, %s905_s5, %s171_s26  }
  0x61   : > { %p1018_p7 = scmp.ne.s32.totalorder %s1013_s24, 0 }
  0x62   : > { %s935_s7 = sand.u32 (!%p1018_p7), 1, %s712_s13   ;;  %p1019_p3 = scmp.ne.s32.totalorder (!%p1018_p7), %s1011_s22, 0 }
  0x63   : > { %193 = sbr.rel (%p1018_p7) target bundleno = 269 (0x10d), region = 32  ;;  %s454_s8 = sshll.u32 (!%p1018_p7), %s935_s7, 3 }
  0x64   : > { %s196_s10 = scalar_lea.sflag (!%p1018_p7), [#allocation3], %s935_s7  ;;  %s199_s11 = scalar_lea.vmem (!%p1018_p7), [#allocation2], %s454_s8 }
  0x6a   : > { %695 = dma.done.wait (%p1019_p3), %s196_s10, 128  }
  0x6b   : > { %697 = vsyncadd (%p1019_p3), %s196_s10, 4294967168  ;;  %p1020_p1 = scmp.ne.s32.totalorder %s1009_s20, 0 }
  0x6d   : > { %699 = dma.done.wait (%p1020_p1), [#allocation6], 256  }
  0x6e   : > { %701 = vsyncadd (%p1020_p1), [#allocation6], 4294967040  ;;  %v733_v0 = vmov 0   ;;  %v734_v1 = vmov 2   ;;  %v233_v2 = vld [vmem:[#allocation5] sm:$0xff]  ;;  %v312_v3 = vld [vmem:[#allocation7] sm:$0xff]  ;;  %v240_v5 = vlaneseq }
  0x6f   : > { %551 = vset.pattern.permute.xlu0 %v733_v0  ;;  %553 = vset.pattern.permute.xlu1 %v734_v1  ;;  %v735_v4 = vmov 1   ;;  %v232_v9 = vld [vmem:[%s199_s11] sm:$0x77]  ;;  %s457_s20 = sshll.u32 %s935_s7, 4  ;;  %s464_s22 = sshll.u32 %s720_s15, 8 }
  0x70   : > { %236 = vperm.xlu0 %551, %v233_v2   ;;  %287 = vperm.xlu1 %553, %v233_v2   ;;  %v241_v6 = vshrl.u32 %v240_v5, 7  ;;  %s229_s24 = scalar_lea.vmem [#allocation8], %s457_s20  ;;  %s952_s26 = scalar_lea.hbm %s1004_s3, %s464_s22 }
  0x71   : > { %s341_s4 = sshll.u32 %s229_s24, 4  ;;  %s325_s28 = scalar_lea.sflag [#allocation4], %s935_s7  ;;  %s954_s4 = int_to_ptr.vmem [resolvable:$true] %s341_s4 }
  0x72   : > { %v242_v7 = vsub.s32 0, %v241_v6  ;;  %v246_v8 = vsub.s32 4, %v241_v6  ;;  %v266_v10 = vsub.s32 1, %v241_v6  ;;  %v270_v11 = vsub.s32 5, %v241_v6  ;;  %s642_s15 = scalar_lea.vmem %s954_s4, 256  ;;  %s736_s19 = smov [#allocation8]  }
  0x73   : > { %v292_v12 = vsub.s32 2, %v241_v6  ;;  %v296_v13 = vsub.s32 6, %v241_v6  ;;  %p643_p11 = scmp.ne.s32.totalorder %s954_s4, %s642_s15  ;;  %s646_s18 = sshll.u32 %s736_s19, 4  ;;  %s647_s18 = int_to_ptr.vmem [resolvable:$false] %s646_s18 }
  0x74   : > { %552 = vset.pattern.permute.xlu0 %v735_v4  ;;  %554 = vset.pattern.permute.xlu1 %v733_v0  ;;  %v243_v14 = vrot.slane %v232_v9, %v242_v7  ;;  %v247_v15 = vrot.slane %v232_v9, %v246_v8  ;;  %v267_v16 = vrot.slane %v232_v9, %v266_v10  ;;  %s648_s27 = scalar_lea.vmem %s647_s18, 512  ;;  %p649_p6 = scmp.lt.s32.totalorder %s954_s4, %s647_s18 }
  0x75   : > { %261 = vperm.xlu0 %552, %v233_v2   ;;  %315 = vperm.xlu1 %554, %v312_v3   ;;  %v271_v17 = vrot.slane %v232_v9, %v270_v11  ;;  %v293_v18 = vrot.slane %v232_v9, %v292_v12  ;;  %v297_v19 = vrot.slane %v232_v9, %v296_v13  ;;  %p644_p4 = pnand %p643_p11, %p883_p8  ;;  %p650_p12 = scmp.lt.s32.totalorder %s648_s27, %s642_s15 }
  0x76   : > { %v253_v21 = vrot.slane %v243_v14, %v242_v7  ;;  %v257_v22 = vrot.slane %v247_v15, %v242_v7  ;;  %v277_v23 = vrot.slane %v267_v16, %v266_v10 }
  0x77   : > { %v281_v24 = vrot.slane %v271_v17, %v266_v10  ;;  %v303_v25 = vrot.slane %v293_v18, %v292_v12  ;;  %v307_v26 = vrot.slane %v297_v19, %v292_v12  ;;  %p645_p2 = pneg %p644_p4  ;;  %p651_p0 = por %p650_p12, %p649_p6 }
  0x79   : > { %555 = vset.pattern.permute.xlu0 %v733_v0  ;;  %p652_p5 = pnand %p651_p0, %p645_p2 }
  0xef   : > { %v237_v20 = vpop.permute.xlu0 %236  ;;  %v288_v27 = vpop.permute.xlu1 %287 }
  0xf0   : > { %v258_v28 = vmul.f32 %v253_v21, %v237_v20  ;;  %v259_v29 = vmul.f32 %v257_v22, %v237_v20  ;;  %v308_v33 = vmul.f32 %v303_v25, %v288_v27  ;;  %v309_v34 = vmul.f32 %v307_v26, %v288_v27 }
  0xf4   : > { %v262_v30 = vpop.permute.xlu0 %261  ;;  %v316_v37 = vpop.permute.xlu1 %315 }
  0xf5   : > { %v282_v31 = vmul.f32 %v277_v23, %v262_v30  ;;  %v283_v32 = vmul.f32 %v281_v24, %v262_v30 }
  0xf7   : > { %v284_v35 = vadd.f32 %v282_v31, %v258_v28  ;;  %v285_v36 = vadd.f32 %v283_v32, %v259_v29 }
  0xf9   : > { %v310_v38 = vadd.f32 %v308_v33, %v284_v35  ;;  %v311_v39 = vadd.f32 %v309_v34, %v285_v36 }
  0xfb   : > { %v318_v40 = vadd.f32 %v316_v37, %v310_v38  ;;  %v319_v41 = vadd.f32 %v316_v37, %v311_v39 }
  0xfd   : > { %v320_v42 = vmax.f32 %v318_v40, 0.0  ;;  %v321_v43 = vmax.f32 %v319_v41, 0.0 }
  0xff   : > { %322 = vst [vmem:[%s229_s24] sm:$0xff] %v320_v42  ;;  %323 = vst [vmem:[%s229_s24 + $0x8] sm:$0xff] %v321_v43 }
 0x100   : > { %655 = shalt.err (!%p652_p5)
}
 0x101   : > { %s656_s30 = scalar_lea.hbm %s952_s26, 256  ;;  %s660_s8 = scalar_lea.hbm %s1004_s3, 512 }
 0x102   : > { %p657_p10 = scmp.ne.s32.totalorder %s952_s26, %s656_s30  ;;  %p661_p7 = scmp.lt.u32.totalorder %s952_s26, %s1004_s3 }
 0x103   : > { %p662_p3 = scmp.lt.u32.totalorder %s660_s8, %s656_s30  ;;  %p664_p11 = scmp.lt.u32.totalorder %s656_s30, %s952_s26 }
 0x104   : > { %p658_p13 = pnand %p657_p10, %p883_p8 }
 0x105   : > { %p663_p1 = por %p662_p3, %p661_p7 }
 0x106   : > { %p659_p9 = pneg %p658_p13 }
 0x107   : > { %p665_p4 = por %p664_p11, %p663_p1 }
 0x109   : > { %p666_p2 = pnand %p665_p4, %p659_p9 }
 0x10b   : > { %669 = shalt.err (!%p666_p2)
}
 0x10c   : > { %475 = dma.vmem_to_hbm [thread:$0]  (%p883_p8), %s954_s4, 256, %s952_s26, %s325_s28  }
 0x10d PF: > { %s353_s20 = sand.u32 1, %s708_s12   ;;  %p1021_p6 = scmp.ne.s32.totalorder %s1012_s23, 0 }
 0x10e   : > { %p1022_p12 = scmp.ge.s32.totalorder %s728_s17, 2  ;;  %s354_s22 = scalar_lea.sflag [#allocation4], %s353_s20 }
 0x110   : > { %p489_p0 = pnand %p1022_p12, %p1021_p6 }
 0x112   : > { %703 = dma.done.wait (!%p489_p0), %s354_s22, 256  }
 0x113   : > { %705 = vsyncadd (!%p489_p0), %s354_s22, 4294967040  ;;  %s20_s17 = sadd.s32 1, %s728_s17   ;;  %s1023_s12 = smov %s712_s13 }
 0x114   : > { %p17_p5 = scmp.ge.s32.totalorder %s20_s17, 4   ;;  %s1024_s13 = smov %s716_s14 }
 0x115   : > { %s1025_s14 = smov %s892_s25  ;;  %s1026_s15 = smov %s724_s16 }
 0x116   : > { %s1027_s16 = smov %s1029_s9  ;;  %19 = sbr.rel (!%p17_p5) target bundleno = 7 (0x7), region = 85 }
 0x11d   :  { %359 = vsyncpa [#allocation3], 1 }
 0x11e   :  { %361 = vsyncpa [#allocation3 + $0x1], 1 }
 0x11f   :  { %362 = vsyncpa [#allocation6], 1 }
 0x120   :  { %363 = vsyncpa [#allocation4], 1 }
 0x121   :  { %365 = vsyncpa [#allocation4 + $0x1], 1 }

</bundles_post_ra>
